<compile_context>
chip_gen: v7x
topology: tpu7x:2x2x1
jax: 0.10.0
libtpu: 0.0.40
codegen_flags: <defaults>
</compile_context>

<pallas_src>
import jax
import jax.numpy as jnp
from jax.experimental import pallas as pl
from jax.experimental.pallas import tpu as pltpu

LANES = 128
MAX_BLOCK_ROWS = 8192          # 8192*128*4B = 4 MiB f32 per input per pipeline buffer
VMEM_LIMIT_BYTES = 48 * 1024 * 1024  # fits v7x (64 MiB physical) with headroom


def _is_v7x():
    # Two TensorCores per chip only on v7x; v5e/v6e have one.
    try:
        kind = jax.devices()[0].device_kind.lower()
    except Exception:
        return False
    return "v7" in kind


def content_loss_forward(x, target):
    """Returns (x, loss) matching ContentLoss.forward.

    x, target: arrays of identical shape (e.g. NCHW feature maps), any float dtype.
    loss: scalar float32 mean squared error over all elements (None if target is None).
    """
    if target is None:
        # TODO(synk): PyTorch stores loss as mutable module state; here it is returned.
        return x, None
    assert x.shape == target.shape, "x and target must have the same shape"

    total = x.size
    if total == 0:
        return x, jnp.float32(0.0)

    xf = x.reshape(-1)
    tf = target.reshape(-1)

    itemsize = jnp.dtype(x.dtype).itemsize
    dtype_sublane = {4: 8, 2: 16, 1: 32}.get(itemsize, 8)  # min sublane tile per dtype

    rem = total % LANES
    main_total = total - rem
    rows = main_total // LANES

    tail_sum = jnp.float32(0.0)
    if rem:
        # TODO(synk): a 128-unaligned element count forces one prefix-slice copy for the
        # 2D view below; the sub-128 remainder itself is summed here in plain JAX.
        xt = xf[main_total:].astype(jnp.float32)
        tt = tf[main_total:].astype(jnp.float32)
        tail_sum = jnp.sum((xt - tt) ** 2)

    if rows < dtype_sublane:
        # Tiny input: a kernel launch is not worth it.
        xm = xf[:main_total].astype(jnp.float32)
        tm = tf[:main_total].astype(jnp.float32)
        loss = (jnp.sum((xm - tm) ** 2) + tail_sum) * jnp.float32(1.0 / total)
        return x, loss

    if rem:
        x2 = xf[:main_total].reshape(rows, LANES)
        t2 = tf[:main_total].reshape(rows, LANES)
    else:
        x2 = xf.reshape(rows, LANES)   # free metadata-only reshape, no HBM copy
        t2 = tf.reshape(rows, LANES)

    # Largest block that (a) respects the dtype's sublane tile, (b) never exceeds the
    # array's row extent, (c) is capped at MAX_BLOCK_ROWS for VMEM.
    block_rows = min(MAX_BLOCK_ROWS, (rows // dtype_sublane) * dtype_sublane)
    blocks_total = pl.cdiv(rows, block_rows)

    num_cores = 2 if (_is_v7x() and blocks_total >= 2) else 1
    blocks_per_core = pl.cdiv(blocks_total, num_cores)

    # Accumulator slab height: as many independent VALU add chains as the block allows.
    if block_rows % 32 == 0:
        acc_rows = 32
    elif block_rows % 16 == 0:
        acc_rows = 16
    else:
        acc_rows = 8

    def index_map(c, j):
        # Clamp so over-hang grid steps (blocks_total not divisible by num_cores) never
        # issue an out-of-bounds DMA; their contribution is zeroed by the in-kernel mask.
        return (jnp.minimum(c * blocks_per_core + j, blocks_total - 1), 0)

    def kernel(x_ref, t_ref, o_ref, acc_ref):
        c = pl.program_id(0)
        j = pl.program_id(1)

        @pl.when(j == 0)
        def _():
            acc_ref[...] = jnp.zeros_like(acc_ref)

        d = x_ref[...].astype(jnp.float32) - t_ref[...].astype(jnp.float32)
        sq = d * d

        # In-kernel tail mask: rows at/after `rows` (ragged last block, clamped over-hang
        # blocks) contribute zero. (block_rows, 1) mask ~ one extra VPU pass, hidden
        # under the DMA roofline.
        start_row = (c * blocks_per_core + j) * block_rows
        row_ids = start_row + jax.lax.broadcasted_iota(jnp.int32, (block_rows, 1), 0)
        sq = jnp.where(row_ids < rows, sq, 0.0)

        # Fold (block_rows, 128) into (acc_rows, 128): pure VPU elementwise adds,
        # acc_rows/8 independent accumulation chains.
        acc_ref[...] += jnp.sum(sq.reshape(-1, acc_rows, LANES), axis=0)

        # Epilogue only: single full-width unmasked store of the partial-sum slab.
        @pl.when(j == pl.num_programs(1) - 1)
        def _():
            o_ref[...] = acc_ref[...]

    streamed_bytes = 2 * num_cores * blocks_per_core * block_rows * LANES * itemsize
    cost = pl.CostEstimate(
        flops=3 * total,  # sub, mul, add per element
        transcendentals=0,
        bytes_accessed=int(streamed_bytes + num_cores * acc_rows * LANES * 4),
    )

    partials = pl.pallas_call(
        kernel,
        out_shape=jax.ShapeDtypeStruct((num_cores * acc_rows, LANES), jnp.float32),
        grid_spec=pltpu.PrefetchScalarGridSpec(
            num_scalar_prefetch=0,
            grid=(num_cores, blocks_per_core),
            in_specs=[pl.BlockSpec((block_rows, LANES), index_map),
                      pl.BlockSpec((block_rows, LANES), index_map)],
            out_specs=pl.BlockSpec((acc_rows, LANES), lambda c, j: (c, 0)),
            scratch_shapes=[pltpu.VMEM((acc_rows, LANES), jnp.float32)],
        ),
        compiler_params=pltpu.CompilerParams(
            # Leading axis shards the reduction across TensorCores on v7x (size 1
            # elsewhere); trailing axis is the sequential reduction with a resident
            # accumulator.
            # TODO(synk): on v7x, flip to pltpu.CORE_PARALLEL if plain "parallel" is
            # verified not to shard the leading axis across the two TensorCores.
            dimension_semantics=("parallel", "arbitrary"),
            vmem_limit_bytes=VMEM_LIMIT_BYTES,
        ),
        cost_estimate=cost,
    )(x2, t2)

    # Tiny epilogue in plain JAX: combine the per-core partial slabs + tail and scale.
    loss = (jnp.sum(partials) + tail_sum) * jnp.float32(1.0 / total)

    # ContentLoss.forward returns its input unchanged (identity pass-through).
    return x, loss


if __name__ == "__main__":
    key = jax.random.PRNGKey(0)
    kx, kt = jax.random.split(key)

    # Small NCHW feature-map shape consistent with the module's usage (128-aligned).
    shape = (2, 4, 16, 16)
    x = jax.random.normal(kx, shape, dtype=jnp.float32)
    target = jax.random.normal(kt, shape, dtype=jnp.float32)

    y, loss = content_loss_forward(x, target)
    jax.block_until_ready((y, loss))
    ref_loss = jnp.mean((x - target) ** 2)
    assert jnp.allclose(loss, ref_loss, rtol=1e-5, atol=1e-6), (loss, ref_loss)
    assert jnp.array_equal(y, x)  # forward returns x unchanged

    # Non-128-aligned shape: exercises the in-kernel ragged-row mask + plain-JAX tail.
    shape2 = (2, 3, 17, 16)  # 1632 elements = 12 full rows of 128 + 96 remainder
    kx2, kt2 = jax.random.split(jax.random.PRNGKey(0), 2)
    x2 = jax.random.normal(kx2, shape2, dtype=jnp.float32)
    t2 = jax.random.normal(kt2, shape2, dtype=jnp.float32)
    y2, loss2 = content_loss_forward(x2, t2)
    jax.block_until_ready((y2, loss2))
    ref_loss2 = jnp.mean((x2 - t2) ** 2)
    assert jnp.allclose(loss2, ref_loss2, rtol=1e-5, atol=1e-6), (loss2, ref_loss2)
    assert jnp.array_equal(y2, x2)

    print("KERNEL_OK")
</pallas_src>

<mosaic_0001>
module attributes {stable_mosaic.version = 11 : i64} {
  func.func @kernel(%arg0: i32, %arg1: i32, %arg2: memref<16x128xf32, #tpu.memory_space<vmem>>, %arg3: memref<16x128xf32, #tpu.memory_space<vmem>>, %arg4: memref<16x128xf32, #tpu.memory_space<vmem>>, %arg5: memref<16x128xf32, #tpu.memory_space<vmem>>) attributes {dimension_semantics = [#tpu.dimension_semantics<parallel>, #tpu.dimension_semantics<arbitrary>], iteration_bounds = array<i64: 1, 1>, scalar_prefetch = 0 : i64, scratch_operands = 1 : i64, tpu.core_type = #tpu.core_type<tc>, window_params = [{transform_indices = @transform_0, window_bounds = array<i64: 16, 128>}, {transform_indices = @transform_1, window_bounds = array<i64: 16, 128>}, {transform_indices = @transform_2, window_bounds = array<i64: 16, 128>}]} {
    %c0_i32 = arith.constant 0 : i32
    %0 = arith.cmpi eq, %arg1, %c0_i32 : i32
    %1 = arith.extui %0 : i1 to i32
    %c0_i32_0 = arith.constant 0 : i32
    %2 = arith.cmpi ne, %1, %c0_i32_0 : i32
    scf.if %2 {
      %cst_12 = arith.constant 0.000000e+00 : f32
      %27 = vector.broadcast %cst_12 : f32 to vector<16x128xf32>
      %c0_13 = arith.constant 0 : index
      %c0_14 = arith.constant 0 : index
      %28 = vector.load %arg5[%c0_13, %c0_14] : memref<16x128xf32, #tpu.memory_space<vmem>>, vector<16x128xf32>
      tpu.vector_store %arg5[%c0_13, %c0_14], %27 {strides = array<i32>} : memref<16x128xf32, #tpu.memory_space<vmem>>, vector<16x128xf32>,
    } else {
    }
    %c0 = arith.constant 0 : index
    %c0_1 = arith.constant 0 : index
    %3 = vector.load %arg2[%c0, %c0_1] : memref<16x128xf32, #tpu.memory_space<vmem>>, vector<16x128xf32>
    %c0_2 = arith.constant 0 : index
    %c0_3 = arith.constant 0 : index
    %4 = vector.load %arg3[%c0_2, %c0_3] : memref<16x128xf32, #tpu.memory_space<vmem>>, vector<16x128xf32>
    %5 = arith.subf %3, %4 : vector<16x128xf32>
    %6 = arith.mulf %5, %5 : vector<16x128xf32>
    %c1_i32 = arith.constant 1 : i32
    %7 = arith.muli %arg0, %c1_i32 : i32
    %8 = arith.addi %7, %arg1 : i32
    %c16_i32 = arith.constant 16 : i32
    %9 = arith.muli %8, %c16_i32 : i32
    %10 = tpu.iota {dimensions = array<i32: 0>} : vector<16x1xi32>
    %11 = vector.broadcast %9 : i32 to vector<16x1xi32>
    %12 = arith.addi %11, %10 : vector<16x1xi32>
    %c16_i32_4 = arith.constant 16 : i32
    %13 = vector.broadcast %c16_i32_4 : i32 to vector<16x1xi32>
    %14 = arith.cmpi slt, %12, %13 : vector<16x1xi32>
    %cst = arith.constant 0.000000e+00 : f32
    %15 = vector.shape_cast %14 : vector<16x1xi1> to vector<16x1xi1>
    %16 = vector.broadcast %15 : vector<16x1xi1> to vector<16x128xi1>
    %17 = vector.broadcast %cst : f32 to vector<16x128xf32>
    %18 = arith.select %16, %6, %17 : vector<16x128xi1>, vector<16x128xf32>
    %c0_5 = arith.constant 0 : index
    %c0_6 = arith.constant 0 : index
    %19 = vector.load %arg5[%c0_5, %c0_6] : memref<16x128xf32, #tpu.memory_space<vmem>>, vector<16x128xf32>
    %20 = vector.shape_cast %18 : vector<16x128xf32> to vector<1x16x128xf32>
    %cst_7 = arith.constant dense<0.000000e+00> : vector<16x128xf32>
    %21 = vector.multi_reduction <add>, %20, %cst_7 [0] : vector<1x16x128xf32> to vector<16x128xf32>
    %22 = arith.addf %19, %21 : vector<16x128xf32>
    %c0_8 = arith.constant 0 : index
    %c0_9 = arith.constant 0 : index
    %23 = vector.load %arg5[%c0_8, %c0_9] : memref<16x128xf32, #tpu.memory_space<vmem>>, vector<16x128xf32>
    tpu.vector_store %arg5[%c0_8, %c0_9], %22 {strides = array<i32>} : memref<16x128xf32, #tpu.memory_space<vmem>>, vector<16x128xf32>,
    %c0_i32_10 = arith.constant 0 : i32
    %24 = arith.cmpi eq, %arg1, %c0_i32_10 : i32
    %25 = arith.extui %24 : i1 to i32
    %c0_i32_11 = arith.constant 0 : i32
    %26 = arith.cmpi ne, %25, %c0_i32_11 : i32
    scf.if %26 {
      %c0_12 = arith.constant 0 : index
      %c0_13 = arith.constant 0 : index
      %27 = vector.load %arg5[%c0_12, %c0_13] : memref<16x128xf32, #tpu.memory_space<vmem>>, vector<16x128xf32>
      %c0_14 = arith.constant 0 : index
      %c0_15 = arith.constant 0 : index
      %28 = vector.load %arg4[%c0_14, %c0_15] : memref<16x128xf32, #tpu.memory_space<vmem>>, vector<16x128xf32>
      tpu.vector_store %arg4[%c0_14, %c0_15], %27 {strides = array<i32>} : memref<16x128xf32, #tpu.memory_space<vmem>>, vector<16x128xf32>,
    } else {
    }
    return
  }
  func.func @transform_0(%arg0: i32, %arg1: i32) -> (i32, i32) {
    %c1_i32 = arith.constant 1 : i32
    %0 = arith.muli %arg0, %c1_i32 : i32
    %1 = arith.addi %0, %arg1 : i32
    %c0_i32 = arith.constant 0 : i32
    %2 = arith.minsi %1, %c0_i32 : i32
    %c0_i32_0 = arith.constant 0 : i32
    %c0_i32_1 = arith.constant 0 : i32
    return %2, %c0_i32_0 : i32, i32
  }
  func.func @transform_1(%arg0: i32, %arg1: i32) -> (i32, i32) {
    %c1_i32 = arith.constant 1 : i32
    %0 = arith.muli %arg0, %c1_i32 : i32
    %1 = arith.addi %0, %arg1 : i32
    %c0_i32 = arith.constant 0 : i32
    %2 = arith.minsi %1, %c0_i32 : i32
    %c0_i32_0 = arith.constant 0 : i32
    %c0_i32_1 = arith.constant 0 : i32
    return %2, %c0_i32_0 : i32, i32
  }
  func.func @transform_2(%arg0: i32, %arg1: i32) -> (i32, i32) {
    %c0_i32 = arith.constant 0 : i32
    %c0_i32_0 = arith.constant 0 : i32
    return %arg0, %c0_i32 : i32, i32
  }
}

</mosaic_0001>

<bundles_post_ra>
// kernel: tpu_custom_call.1
= control target key start
LH: loop header
LB: loop body
LE: loop exit
PB: predicated region body
PF: predicated region fallthrough
CT: control target
= control target key end

     0   :  { %7 = vsyncpa [#allocation4], 0  ;;  %s269_s0 = inlined_call_operand.hbm [shape: f32[16,128], index: 0, kind: input, shape index: {}]   ;;  %s270_s1 = inlined_call_operand.hbm [shape: f32[16,128], index: 1, kind: input, shape index: {}]   ;;  %s271_s2 = inlined_call_operand.hbm [shape: f32[16,128], index: 2, kind: output, shape index: {}]  }
   0x1   :  { %8 = vsyncpa [#allocation7], 0 }
   0x2   :  { %9 = vsyncpa [#allocation5], 0  ;;  %s204_s9 = smov [#allocation3]   ;;  %s132_s13 = scalar_lea.hbm %s269_s0, 256 }
   0x3   :  { %s21_s10 = sshll.u32 %s204_s9, 4  ;;  %p133_p0 = scmp.ne.s32.totalorder %s269_s0, %s132_s13  ;;  %s22_s10 = int_to_ptr.vmem [resolvable:$true] %s21_s10 }
   0x4   :  { %p136_p1 = scmp.lt.u32.totalorder %s132_s13, %s269_s0 }
   0x6   :  { %p138_p2 = pnand %p136_p1, %p133_p0 }
   0x8   :  { %141 = shalt.err (!%p138_p2)
}
   0x9   :  { %s142_s18 = scalar_lea.vmem %s22_s10, 256  ;;  %p147_p4 = scmp.lt.s32.totalorder %s22_s10, %s22_s10 }
   0xa   :  { %p143_p3 = scmp.ne.s32.totalorder %s22_s10, %s142_s18  ;;  %p148_p5 = scmp.lt.s32.totalorder %s142_s18, %s142_s18 }
   0xc   :  { %p149_p6 = por %p148_p5, %p147_p4 }
   0xe   :  { %p150_p7 = pnand %p149_p6, %p143_p3 }
  0x10   :  { %153 = shalt.err (!%p150_p7)
}
  0x11   :  { %s205_s19 = smov 128   ;;  %s206_s20 = smov 8  }
  0x12   :  { %27 = dma.hbm_to_vmem [thread:$0]  %s269_s0, 256, %s22_s10, [#allocation4], %s205_s19, %s205_s19, %s206_s20  }
  0x13   :  { %s207_s23 = smov [#allocation6]   ;;  %s154_s27 = scalar_lea.hbm %s270_s1, 256 }
  0x14   :  { %s39_s24 = sshll.u32 %s207_s23, 4  ;;  %p155_p8 = scmp.ne.s32.totalorder %s270_s1, %s154_s27  ;;  %s40_s24 = int_to_ptr.vmem [resolvable:$true] %s39_s24 }
  0x15   :  { %p158_p9 = scmp.lt.u32.totalorder %s154_s27, %s270_s1 }
  0x17   :  { %p160_p10 = pnand %p158_p9, %p155_p8 }
  0x19   :  { %163 = shalt.err (!%p160_p10)
}
  0x1a   :  { %s164_s4 = scalar_lea.vmem %s40_s24, 256  ;;  %p169_p12 = scmp.lt.s32.totalorder %s40_s24, %s40_s24 }
  0x1b   :  { %p165_p11 = scmp.ne.s32.totalorder %s40_s24, %s164_s4  ;;  %p170_p13 = scmp.lt.s32.totalorder %s164_s4, %s164_s4 }
  0x1d   :  { %p171_p0 = por %p170_p13, %p169_p12 }
  0x1f   :  { %p172_p1 = pnand %p171_p0, %p165_p11 }
  0x21   :  { %175 = shalt.err (!%p172_p1)
}
  0x22   :  { %45 = dma.hbm_to_vmem [thread:$0]  %s270_s1, 256, %s40_s24, [#allocation7], %s205_s19, %s205_s19, %s206_s20  }
  0x23   :  { %198 = dma.done.wait [#allocation4], 256  }
  0x24   :  { %199 = vsyncadd [#allocation4], 4294967040 }
  0x25   :  { %200 = dma.done.wait [#allocation7], 256  }
  0x26   :  { %201 = vsyncadd [#allocation7], 4294967040  ;;  %v66_v0 = vld [vmem:[#allocation3] sm:$0xff]  ;;  %v68_v1 = vld [vmem:[#allocation6] sm:$0xff]  ;;  %s208_s6 = smov [#allocation8]  }
  0x27   :  { %v67_v2 = vld [vmem:[#allocation3 + $0x8] sm:$0xff]  ;;  %v70_v3 = vsub.f32 %v66_v0, %v68_v1  ;;  %v69_v4 = vld [vmem:[#allocation6 + $0x8] sm:$0xff]  ;;  %s110_s7 = sshll.u32 %s208_s6, 4  ;;  %s111_s7 = int_to_ptr.vmem [resolvable:$true] %s110_s7 }
  0x28   :  { %v71_v5 = vsub.f32 %v67_v2, %v69_v4  ;;  %s176_s8 = scalar_lea.vmem %s111_s7, 256  ;;  %p181_p3 = scmp.lt.s32.totalorder %s111_s7, %s111_s7 }
  0x29   :  { %v72_v6 = vmul.f32 %v70_v3, %v70_v3  ;;  %p177_p2 = scmp.ne.s32.totalorder %s111_s7, %s176_s8  ;;  %p182_p4 = scmp.lt.s32.totalorder %s176_s8, %s176_s8 }
  0x2a   :  { %v73_v7 = vmul.f32 %v71_v5, %v71_v5 }
  0x2b   :  { %103 = vst [vmem:[#allocation8] sm:$0xff] %v72_v6  ;;  %p183_p5 = por %p182_p4, %p181_p3 }
  0x2c   :  { %104 = vst [vmem:[#allocation8 + $0x8] sm:$0xff] %v73_v7 }
  0x2d   :  { %p184_p6 = pnand %p183_p5, %p177_p2 }
  0x2f   :  { %187 = shalt.err (!%p184_p6)
}
  0x30   :  { %s188_s10 = scalar_lea.hbm %s271_s2, 256 }
  0x31   :  { %p189_p7 = scmp.ne.s32.totalorder %s271_s2, %s188_s10  ;;  %p192_p8 = scmp.lt.u32.totalorder %s188_s10, %s271_s2 }
  0x33   :  { %p194_p9 = pnand %p192_p8, %p189_p7 }
  0x35   :  { %197 = shalt.err (!%p194_p9)
}
  0x36   :  { %116 = dma.vmem_to_hbm [thread:$0]  %s111_s7, 256, %s271_s2, [#allocation5], %s205_s19, %s205_s19, %s206_s20  }
  0x37   :  { %202 = dma.done.wait [#allocation5], 256  }
  0x38   :  { %203 = vsyncadd [#allocation5], 4294967040 }
  0x39   :  { %120 = vsyncpa [#allocation4], 1 }
  0x3a   :  { %121 = vsyncpa [#allocation7], 1 }
  0x3b   :  { %122 = vsyncpa [#allocation5], 1 }

</bundles_post_ra>
